<compile_context>
chip_gen: v7x
topology: tpu7x:2x2x1
jax: 0.10.0
libtpu: 0.0.40
codegen_flags: <defaults>
</compile_context>

<pallas_src>
import math

import jax
import jax.numpy as jnp
from jax.experimental import pallas as pl
from jax.experimental.pallas import tpu as pltpu


_VMEM_LIMIT_BYTES = 48 * 1024 * 1024   # < 64 MiB/TC (v7x), well under v5e/v6e physical
_SB_OK = True                          # single-buffer constants via pl.Buffered(1)


def _round_up(x, m):
    return -(-x // m) * m


def _const_spec_kwargs(single_buffer):
    # Grid-constant operands: single-buffer to halve their VMEM footprint.
    return dict(pipeline_mode=pl.Buffered(1)) if single_buffer else {}


def _run_with_const_sb(build, args):
    """build(single_buffer) -> pallas_call callable.  Falls back to default
    (double) buffering if pl.Buffered(1) is rejected by this Pallas version."""
    global _SB_OK
    if _SB_OK:
        try:
            return build(True)(*args)
        except Exception:
            _SB_OK = False
    return build(False)(*args)


# ----------------------------------------------------------------------------
# Tiled projection matmul (pipelined, bf16 operands, fp32 accumulator)
# ----------------------------------------------------------------------------
def _tile_pad(dim, target, align):
    """Pick a tile (multiple of `align`, or the full dim) and the padded dim."""
    if dim <= target:
        return dim, dim                      # full-dim block is always legal
    t = target
    while t >= align:
        if dim % t == 0:
            return t, dim
        t //= 2
    t = min(target, 256)                     # no aligned divisor: pad the dim
    return t, _round_up(dim, t)


def _matmul_kernel(x_ref, w_ref, o_ref, acc_ref):
    @pl.when(pl.program_id(2) == 0)
    def _():
        acc_ref[...] = jnp.zeros_like(acc_ref)

    acc_ref[...] += jnp.dot(x_ref[...], w_ref[...],
                            preferred_element_type=jnp.float32)

    @pl.when(pl.program_id(2) == pl.num_programs(2) - 1)
    def _():
        o_ref[...] = acc_ref[...].astype(o_ref.dtype)


def pallas_matmul(x, w, *, out_dtype=jnp.float32, tm=512, tn=256, tk=256):
    """(M, K) @ (K, N) -> (M, N); pads awkward dims instead of giant blocks."""
    M, K = x.shape
    K2, N = w.shape
    assert K == K2
    tm, Mp = _tile_pad(M, tm, 8)
    tk, Kp = _tile_pad(K, tk, 128)
    tn, Np_ = _tile_pad(N, tn, 128)
    if (Mp, Kp) != (M, K):
        x = jnp.pad(x, ((0, Mp - M), (0, Kp - K)))
    if (Kp, Np_) != (K, N):
        w = jnp.pad(w, ((0, Kp - K), (0, Np_ - N)))
    out = pl.pallas_call(
        _matmul_kernel,
        out_shape=jax.ShapeDtypeStruct((Mp, Np_), out_dtype),
        grid=(Mp // tm, Np_ // tn, Kp // tk),
        in_specs=[pl.BlockSpec((tm, tk), lambda i, j, k: (i, k)),
                  pl.BlockSpec((tk, tn), lambda i, j, k: (k, j))],
        out_specs=pl.BlockSpec((tm, tn), lambda i, j, k: (i, j)),
        scratch_shapes=[pltpu.VMEM((tm, tn), jnp.float32)],
        compiler_params=pltpu.CompilerParams(
            dimension_semantics=("parallel", "parallel", "arbitrary"),
            vmem_limit_bytes=_VMEM_LIMIT_BYTES),
    )(x, w)
    if (Mp, Np_) != (M, N):
        out = out[:M, :N]
    return out


# ----------------------------------------------------------------------------
# Fused gate kernel: LayerNorm -> SiLU MLP -> real/imag gate rows (tiled)
# ----------------------------------------------------------------------------
def _gate_kernel(bar_ref, gamma_ref, beta_ref, wup_ref, wdnr_ref, wdni_ref,
                 gr_ref, gi_ref):
    bar = bar_ref[...]                                        # (tmg, Dh) fp32
    mu = jnp.mean(bar, axis=-1, keepdims=True)
    var = jnp.mean(jnp.square(bar - mu), axis=-1, keepdims=True)
    bar = (bar - mu) * jax.lax.rsqrt(var + 1e-6)              # LN, eps=1e-6, biased var
    bar = bar * gamma_ref[...] + beta_ref[...]
    h = jnp.dot(bar.astype(jnp.bfloat16), wup_ref[...],
                preferred_element_type=jnp.float32)           # (tmg, gh)
    h = (h * jax.nn.sigmoid(h)).astype(jnp.bfloat16)          # SiLU
    gr_ref[...] = jnp.dot(h, wdnr_ref[...], preferred_element_type=jnp.float32)
    gi_ref[...] = jnp.dot(h, wdni_ref[...], preferred_element_type=jnp.float32)


def spectre_gate(bar, consts):
    """bar: (Mg, Dh) fp32 -> (Mg, Fp) real / imag gate rows (fp32)."""
    Mg, Dh = bar.shape
    wup, wdnr, wdni = consts["g_up_t"], consts["wdnr_t"], consts["wdni_t"]
    gh, Fp = wup.shape[1], wdnr.shape[1]
    tmg = 256 if Mg >= 256 else _round_up(Mg, 8)
    Mgp = _round_up(Mg, tmg)
    if Mgp != Mg:
        bar = jnp.pad(bar, ((0, Mgp - Mg), (0, 0)))

    def build(sb):
        ck = _const_spec_kwargs(sb)
        return pl.pallas_call(
            _gate_kernel,
            out_shape=(jax.ShapeDtypeStruct((Mgp, Fp), jnp.float32),
                       jax.ShapeDtypeStruct((Mgp, Fp), jnp.float32)),
            grid=(Mgp // tmg,),
            in_specs=[
                pl.BlockSpec((tmg, Dh), lambda i: (i, 0)),
                pl.BlockSpec((1, Dh), lambda i: (0, 0)),
                pl.BlockSpec((1, Dh), lambda i: (0, 0)),
                pl.BlockSpec((Dh, gh), lambda i: (0, 0), **ck),
                pl.BlockSpec((gh, Fp), lambda i: (0, 0), **ck),
                pl.BlockSpec((gh, Fp), lambda i: (0, 0), **ck),
            ],
            out_specs=(pl.BlockSpec((tmg, Fp), lambda i: (i, 0)),
                       pl.BlockSpec((tmg, Fp), lambda i: (i, 0))),
            compiler_params=pltpu.CompilerParams(
                dimension_semantics=("parallel",),
                vmem_limit_bytes=_VMEM_LIMIT_BYTES),
        )

    gr, gi = _run_with_const_sb(
        build, (bar, consts["ln_gamma"], consts["ln_beta"], wup, wdnr, wdni))
    if Mgp != Mg:
        gr, gi = gr[:Mg], gi[:Mg]
    return gr, gi


# ----------------------------------------------------------------------------
# Spectral mixing kernel: lane-dense DFT matmuls on (Lc, TD) slabs
# ----------------------------------------------------------------------------
def _spectre_mix_kernel(v_ref, gr_ref, gi_ref, e_ref, cr_ref, ci_ref,
                        br_ref, bi_ref, o_ref):
    v = v_ref[0]                                                            # (Lc, TD) bf16

    # rfft (ortho) along the chunk axis via real DFT matmuls.
    spec_re = jnp.dot(cr_ref[...], v, preferred_element_type=jnp.float32)   # (Fp, TD)
    spec_im = jnp.dot(ci_ref[...], v, preferred_element_type=jnp.float32)   # (Fp, TD)

    # Broadcast the per-head complex gate across this D-slab's lanes (tiny matmul).
    # TODO(synk): replace with a VPU lane-broadcast for small Lc (<512).
    grb = jnp.dot(gr_ref[0], e_ref[...], preferred_element_type=jnp.float32)  # (Fp, TD)
    gib = jnp.dot(gi_ref[0], e_ref[...], preferred_element_type=jnp.float32)  # (Fp, TD)

    # Complex gate + irfft (ortho), ordered to keep liveness low:
    re_g = (grb * spec_re - gib * spec_im).astype(jnp.bfloat16)   # Re(gate*spec)
    out = jnp.dot(br_ref[...], re_g, preferred_element_type=jnp.float32)       # (Lc, TD)
    im_g = (grb * spec_im + gib * spec_re).astype(jnp.bfloat16)   # Im(gate*spec)
    out = out + jnp.dot(bi_ref[...], im_g, preferred_element_type=jnp.float32)
    o_ref[0] = out.astype(o_ref.dtype)


def _pick_d_tile(D):
    if D <= 512:
        return D
    for t in (512, 256, 128):
        if D % t == 0:
            return t
    return D   # odd D: full-dim lane slab (still a legal full-extent block)


def spectre_mix(vf, gr, gi, consts):
    """vf: (Mb, Lc, D) bf16; gr/gi: (Mb, Fp, H) bf16 -> (Mb, Lc, D) bf16."""
    Mb, Lc, D = vf.shape
    Fp, H = gr.shape[1], gr.shape[2]
    td = _pick_d_tile(D)
    nd = D // td
    args = (vf, gr, gi, consts["expand"], consts["cr"], consts["ci"],
            consts["br"], consts["bi"])

    def build(sb):
        ck = _const_spec_kwargs(sb)
        return pl.pallas_call(
            _spectre_mix_kernel,
            out_shape=jax.ShapeDtypeStruct((Mb, Lc, D), jnp.bfloat16),
            grid=(Mb, nd),
            in_specs=[
                pl.BlockSpec((1, Lc, td), lambda m, j: (m, 0, j)),   # v slab
                pl.BlockSpec((1, Fp, H), lambda m, j: (m, 0, 0)),    # gate real
                pl.BlockSpec((1, Fp, H), lambda m, j: (m, 0, 0)),    # gate imag
                pl.BlockSpec((H, td), lambda m, j: (0, j)),          # head->lane expand
                pl.BlockSpec((Fp, Lc), lambda m, j: (0, 0), **ck),   # rfft cos
                pl.BlockSpec((Fp, Lc), lambda m, j: (0, 0), **ck),   # rfft -sin
                pl.BlockSpec((Lc, Fp), lambda m, j: (0, 0), **ck),   # irfft cos (weighted)
                pl.BlockSpec((Lc, Fp), lambda m, j: (0, 0), **ck),   # irfft -sin (weighted)
            ],
            out_specs=pl.BlockSpec((1, Lc, td), lambda m, j: (m, 0, j)),
            compiler_params=pltpu.CompilerParams(
                dimension_semantics=("parallel", "parallel"),
                vmem_limit_bytes=_VMEM_LIMIT_BYTES),
        )

    return _run_with_const_sb(build, args)


# ----------------------------------------------------------------------------
# Precomputed constants, parameters, forward pass
# ----------------------------------------------------------------------------
def _rdft_matrices(L, Fp, dtype=jnp.bfloat16):
    """Real matrices realizing rfft / irfft (norm='ortho'), zero-padded to Fp bins."""
    F_ = L // 2 + 1
    n = jnp.arange(L, dtype=jnp.float32)
    k = jnp.arange(F_, dtype=jnp.float32)
    ang = 2.0 * jnp.pi * k[:, None] * n[None, :] / L            # (F_, L)
    scale = 1.0 / jnp.sqrt(jnp.float32(L))
    cr = jnp.cos(ang) * scale                                    # rfft real part
    ci = -jnp.sin(ang) * scale                                   # rfft imag part
    w = jnp.full((F_,), 2.0, jnp.float32)
    w = w.at[0].set(1.0)
    if L % 2 == 0:
        w = w.at[-1].set(1.0)
    br = (cr * w[:, None]).T                                     # (L, F_)
    bi = (ci * w[:, None]).T
    p = Fp - F_
    cr = jnp.pad(cr, ((0, p), (0, 0)))
    ci = jnp.pad(ci, ((0, p), (0, 0)))
    br = jnp.pad(br, ((0, 0), (0, p)))
    bi = jnp.pad(bi, ((0, 0), (0, p)))
    return cr.astype(dtype), ci.astype(dtype), br.astype(dtype), bi.astype(dtype)


def init_spectre_params(key, d_model, n_heads, seq_len,
                        chunk_size=None, gate_hidden=None):
    assert d_model % n_heads == 0
    d_head = d_model // n_heads
    chunk = chunk_size or seq_len
    assert chunk >= 8
    gh = gate_hidden or 4 * d_head
    freq_f = seq_len // 2 + 1
    freq_c = chunk // 2 + 1
    if chunk >= seq_len:
        Lc, pad, n_chunks = seq_len, 0, 1
    else:
        pad = (chunk - seq_len % chunk) % chunk
        Lc, n_chunks = chunk, (seq_len + pad) // chunk
    ks = jax.random.split(key, 6)

    def xavier(k, shape, gain=0.8):
        fan_out, fan_in = shape
        a = gain * math.sqrt(6.0 / (fan_in + fan_out))
        return jax.random.uniform(k, shape, jnp.float32, -a, a)

    params = dict(
        w_q=xavier(ks[0], (d_model, d_model)),
        w_v=xavier(ks[1], (d_model, d_model)),
        w_o=xavier(ks[2], (d_model, d_model)),
        g_up=xavier(ks[3], (gh, d_head)),
        g_dn_full=xavier(ks[4], (2 * freq_f, gh)),
        g_dn_chunk=xavier(ks[5], (2 * freq_c, gh)),
        ln_gamma=jnp.ones((d_head,), jnp.float32),
        ln_beta=jnp.zeros((d_head,), jnp.float32),
    )
    cfg = dict(d_model=d_model, n_heads=n_heads, d_head=d_head, seq_len=seq_len,
               chunk=chunk, gh=gh, Lc=Lc, pad=pad, n_chunks=n_chunks)
    return params, cfg


def prepare_spectre_consts(params, cfg):
    """One-time precompute: pre-transposed bf16 weights, padded DFT matrices,
    split gate weights, head->lane expansion."""
    H, Dh = cfg["n_heads"], cfg["d_head"]
    Lc, gh = cfg["Lc"], cfg["gh"]
    F_ = Lc // 2 + 1
    Fp = _round_up(F_, 8)
    cr, ci, br, bi = _rdft_matrices(Lc, Fp)
    expand = jnp.kron(jnp.eye(H, dtype=jnp.float32),
                      jnp.ones((1, Dh), jnp.float32)).astype(jnp.bfloat16)   # (H, D)
    w_dn = params["g_dn_full"] if cfg["chunk"] >= cfg["seq_len"] else params["g_dn_chunk"]
    wdnr_t = jnp.zeros((gh, Fp), jnp.float32).at[:, :F_].set(w_dn[0::2, :].T)
    wdni_t = jnp.zeros((gh, Fp), jnp.float32).at[:, :F_].set(w_dn[1::2, :].T)
    return dict(
        w_q_t=params["w_q"].T.astype(jnp.bfloat16),
        w_v_t=params["w_v"].T.astype(jnp.bfloat16),
        w_o_t=params["w_o"].T.astype(jnp.bfloat16),
        g_up_t=params["g_up"].T.astype(jnp.bfloat16),
        wdnr_t=wdnr_t.astype(jnp.bfloat16),
        wdni_t=wdni_t.astype(jnp.bfloat16),
        ln_gamma=params["ln_gamma"].reshape(1, Dh),
        ln_beta=params["ln_beta"].reshape(1, Dh),
        cr=cr, ci=ci, br=br, bi=bi, expand=expand,
        Fp=Fp, F_=F_)


def spectre_forward(x, consts, cfg):
    B, N, D = x.shape
    H, Dh = cfg["n_heads"], cfg["d_head"]
    assert N == cfg["seq_len"]
    Lc, pad, n_chunks = cfg["Lc"], cfg["pad"], cfg["n_chunks"]
    Np = N + pad
    Mb = B * n_chunks
    Fp = consts["Fp"]

    xb = x.reshape(B * N, D).astype(jnp.bfloat16)

    # --- v projection: bf16 operands / fp32 acc, bf16 intermediate in HBM.
    v = pallas_matmul(xb, consts["w_v_t"], out_dtype=jnp.bfloat16)
    v = v.reshape(B, N, D)
    if pad:
        # TODO(synk): fold the tail-chunk padding (and the [:, :N] slice before
        # w_o) into the kernels to avoid two extra HBM round-trips when pad>0.
        v = jnp.pad(v, ((0, 0), (0, pad), (0, 0)))
    vf = v.reshape(Mb, Lc, D)                      # free reshape, no transpose

    # --- gate path, hoisted via linearity: mean_chunk(x @ Wq^T) == mean_chunk(x) @ Wq^T.
    xp = jnp.pad(x, ((0, 0), (0, pad), (0, 0))) if pad else x
    # TODO(synk): fuse this chunk-mean into the w_v projection kernel (v5e).
    xbar = xp.reshape(B, n_chunks, Lc, D).mean(axis=2).reshape(Mb, D)
    qbar = pallas_matmul(xbar.astype(jnp.bfloat16), consts["w_q_t"],
                         out_dtype=jnp.float32)                        # (Mb, D)
    bar = qbar.reshape(Mb * H, Dh)                                     # rows: (b, chunk, head)
    gr, gi = spectre_gate(bar, consts)                                 # (Mb*H, Fp) fp32
    gr = gr.reshape(Mb, H, Fp).transpose(0, 2, 1).astype(jnp.bfloat16)  # (Mb, Fp, H), tiny
    gi = gi.reshape(Mb, H, Fp).transpose(0, 2, 1).astype(jnp.bfloat16)

    # --- spectral mixing: one program per (batch-chunk, D-slab), lane-dense.
    out = spectre_mix(vf, gr, gi, consts)                              # (Mb, Lc, D) bf16

    # --- output projection directly on the mix output.
    y = out.reshape(B, Np, D)
    if pad:
        y = y[:, :N, :]
    y = y.reshape(B * N, D)
    return pallas_matmul(y, consts["w_o_t"], out_dtype=jnp.float32).reshape(B, N, D)


# ----------------------------------------------------------------------------
# Pure-JAX reference (uses jnp.fft) for verification
# ----------------------------------------------------------------------------
def spectre_forward_ref(x, params, cfg):
    B, N, D = x.shape
    H, Dh = cfg["n_heads"], cfg["d_head"]
    chunk = cfg["chunk"]
    q = (x @ params["w_q"].T).reshape(B, N, H, Dh).transpose(0, 2, 1, 3)
    v = (x @ params["w_v"].T).reshape(B, N, H, Dh).transpose(0, 2, 1, 3)
    if chunk >= N:
        Lc, pad, n_chunks, w_dn = N, 0, 1, params["g_dn_full"]
    else:
        pad = (chunk - N % chunk) % chunk
        Lc, n_chunks, w_dn = chunk, (N + pad) // chunk, params["g_dn_chunk"]
        if pad:
            q = jnp.pad(q, ((0, 0), (0, 0), (0, pad), (0, 0)))
            v = jnp.pad(v, ((0, 0), (0, 0), (0, pad), (0, 0)))
    M = B * H * n_chunks
    qf = q.reshape(M, Lc, Dh)
    vf = v.reshape(M, Lc, Dh)

    bar = qf.mean(axis=1)
    mu = bar.mean(-1, keepdims=True)
    var = ((bar - mu) ** 2).mean(-1, keepdims=True)
    bar = (bar - mu) / jnp.sqrt(var + 1e-6) * params["ln_gamma"] + params["ln_beta"]
    h = bar @ params["g_up"].T
    h = h * jax.nn.sigmoid(h)
    gate = (h @ w_dn.T).reshape(M, -1, 2)
    gate_c = gate[..., 0] + 1j * gate[..., 1]

    spec = jnp.fft.rfft(vf, axis=1, norm="ortho")
    spec = spec * gate_c[:, :, None]
    out = jnp.fft.irfft(spec, n=Lc, axis=1, norm="ortho")

    v_t = out.reshape(B, H, N + pad, Dh)[:, :, :N, :]
    y = v_t.transpose(0, 2, 1, 3).reshape(B, N, D)
    return y @ params["w_o"].T


# ----------------------------------------------------------------------------
if __name__ == "__main__":
    key = jax.random.PRNGKey(0)
    kx, kp = jax.random.split(key)

    B, d_model, n_heads, seq_len = 2, 32, 4, 16
    x = jax.random.normal(kx, (B, seq_len, d_model), jnp.float32)

    def rel_err(a, b):
        return float(jnp.linalg.norm(a - b) / (jnp.linalg.norm(b) + 1e-12))

    # Full-sequence spectral path (chunk = seq_len).
    params, cfg = init_spectre_params(kp, d_model, n_heads, seq_len)
    consts = prepare_spectre_consts(params, cfg)
    y = jax.block_until_ready(spectre_forward(x, consts, cfg))
    y_ref = spectre_forward_ref(x, params, cfg)
    assert y.shape == (B, seq_len, d_model)
    assert rel_err(y, y_ref) < 3e-2, "full path mismatch"

    # Chunked path (chunk_size = 8 < seq_len): uses g_dn_chunk, per-chunk gates.
    params_c, cfg_c = init_spectre_params(kp, d_model, n_heads, seq_len,
                                          chunk_size=8)
    consts_c = prepare_spectre_consts(params_c, cfg_c)
    y_c = jax.block_until_ready(spectre_forward(x, consts_c, cfg_c))
    y_c_ref = spectre_forward_ref(x, params_c, cfg_c)
    assert rel_err(y_c, y_c_ref) < 3e-2, "chunk path mismatch"

    print("KERNEL_OK")
</pallas_src>

<mosaic_0001>
module attributes {stable_mosaic.version = 11 : i64} {
  func.func @_matmul_kernel(%arg0: i32, %arg1: i32, %arg2: i32, %arg3: memref<32x32xbf16, #tpu.memory_space<vmem>>, %arg4: memref<32x32xbf16, #tpu.memory_space<vmem>>, %arg5: memref<32x32xbf16, #tpu.memory_space<vmem>>, %arg6: memref<32x32xf32, #tpu.memory_space<vmem>>) attributes {dimension_semantics = [#tpu.dimension_semantics<parallel>, #tpu.dimension_semantics<parallel>, #tpu.dimension_semantics<arbitrary>], iteration_bounds = array<i64: 1, 1, 1>, scalar_prefetch = 0 : i64, scratch_operands = 1 : i64, tpu.core_type = #tpu.core_type<tc>, window_params = [{transform_indices = @transform_0, window_bounds = array<i64: 32, 32>}, {transform_indices = @transform_1, window_bounds = array<i64: 32, 32>}, {transform_indices = @transform_2, window_bounds = array<i64: 32, 32>}]} {
    %c0_i32 = arith.constant 0 : i32
    %0 = arith.cmpi eq, %arg2, %c0_i32 : i32
    %1 = arith.extui %0 : i1 to i32
    %c0_i32_0 = arith.constant 0 : i32
    %2 = arith.cmpi ne, %1, %c0_i32_0 : i32
    scf.if %2 {
      %cst_10 = arith.constant 0.000000e+00 : f32
      %12 = vector.broadcast %cst_10 : f32 to vector<32x32xf32>
      %c0_11 = arith.constant 0 : index
      %c0_12 = arith.constant 0 : index
      %13 = vector.load %arg6[%c0_11, %c0_12] : memref<32x32xf32, #tpu.memory_space<vmem>>, vector<32x32xf32>
      tpu.vector_store %arg6[%c0_11, %c0_12], %12 {strides = array<i32>} : memref<32x32xf32, #tpu.memory_space<vmem>>, vector<32x32xf32>,
    } else {
    }
    %c0 = arith.constant 0 : index
    %c0_1 = arith.constant 0 : index
    %3 = vector.load %arg6[%c0, %c0_1] : memref<32x32xf32, #tpu.memory_space<vmem>>, vector<32x32xf32>
    %c0_2 = arith.constant 0 : index
    %c0_3 = arith.constant 0 : index
    %4 = vector.load %arg3[%c0_2, %c0_3] : memref<32x32xbf16, #tpu.memory_space<vmem>>, vector<32x32xbf16>
    %c0_4 = arith.constant 0 : index
    %c0_5 = arith.constant 0 : index
    %5 = vector.load %arg4[%c0_4, %c0_5] : memref<32x32xbf16, #tpu.memory_space<vmem>>, vector<32x32xbf16>
    %cst = arith.constant dense<0.000000e+00> : vector<32x32xf32>
    %6 = tpu.matmul %4, %5, %cst {dimension_numbers = #tpu.dot_dimension_numbers<[1], [0], [0], [1], [0, 0, 1, 1], [], []>} : vector<32x32xbf16>, vector<32x32xbf16>, vector<32x32xf32> -> vector<32x32xf32>
    %7 = arith.addf %3, %6 : vector<32x32xf32>
    %c0_6 = arith.constant 0 : index
    %c0_7 = arith.constant 0 : index
    %8 = vector.load %arg6[%c0_6, %c0_7] : memref<32x32xf32, #tpu.memory_space<vmem>>, vector<32x32xf32>
    tpu.vector_store %arg6[%c0_6, %c0_7], %7 {strides = array<i32>} : memref<32x32xf32, #tpu.memory_space<vmem>>, vector<32x32xf32>,
    %c0_i32_8 = arith.constant 0 : i32
    %9 = arith.cmpi eq, %arg2, %c0_i32_8 : i32
    %10 = arith.extui %9 : i1 to i32
    %c0_i32_9 = arith.constant 0 : i32
    %11 = arith.cmpi ne, %10, %c0_i32_9 : i32
    scf.if %11 {
      %c0_10 = arith.constant 0 : index
      %c0_11 = arith.constant 0 : index
      %12 = vector.load %arg6[%c0_10, %c0_11] : memref<32x32xf32, #tpu.memory_space<vmem>>, vector<32x32xf32>
      %13 = arith.truncf %12 : vector<32x32xf32> to vector<32x32xbf16>
      %c0_12 = arith.constant 0 : index
      %c0_13 = arith.constant 0 : index
      %14 = vector.load %arg5[%c0_12, %c0_13] : memref<32x32xbf16, #tpu.memory_space<vmem>>, vector<32x32xbf16>
      tpu.vector_store %arg5[%c0_12, %c0_13], %13 {strides = array<i32>} : memref<32x32xbf16, #tpu.memory_space<vmem>>, vector<32x32xbf16>,
    } else {
    }
    return
  }
  func.func @transform_0(%arg0: i32, %arg1: i32, %arg2: i32) -> (i32, i32) {
    %c0_i32 = arith.constant 0 : i32
    return %arg0, %arg2 : i32, i32
  }
  func.func @transform_1(%arg0: i32, %arg1: i32, %arg2: i32) -> (i32, i32) {
    %c0_i32 = arith.constant 0 : i32
    return %arg2, %arg1 : i32, i32
  }
  func.func @transform_2(%arg0: i32, %arg1: i32, %arg2: i32) -> (i32, i32) {
    %c0_i32 = arith.constant 0 : i32
    return %arg0, %arg1 : i32, i32
  }
}

</mosaic_0001>

<bundles_post_ra>
// kernel: tpu_custom_call.1
= control target key start
LH: loop header
LB: loop body
LE: loop exit
PB: predicated region body
PF: predicated region fallthrough
CT: control target
= control target key end

     0   :  { %7 = vsyncpa [#allocation4], 0  ;;  %s378_s0 = inlined_call_operand.hbm [shape: bf16[32,32], index: 0, kind: input, shape index: {}]   ;;  %s379_s1 = inlined_call_operand.hbm [shape: bf16[32,32], index: 1, kind: input, shape index: {}]   ;;  %s380_s2 = inlined_call_operand.hbm [shape: bf16[32,32], index: 2, kind: output, shape index: {}]  }
   0x1   :  { %8 = vsyncpa [#allocation7], 0 }
   0x2   :  { %9 = vsyncpa [#allocation5], 0  ;;  %s302_s9 = smov [#allocation3]   ;;  %s230_s13 = scalar_lea.hbm %s378_s0, 256 }
   0x3   :  { %s15_s10 = sshll.u32 %s302_s9, 4  ;;  %p231_p0 = scmp.ne.s32.totalorder %s378_s0, %s230_s13  ;;  %s16_s10 = int_to_ptr.vmem [resolvable:$true] %s15_s10 }
   0x4   :  { %p234_p1 = scmp.lt.u32.totalorder %s230_s13, %s378_s0 }
   0x6   :  { %p236_p2 = pnand %p234_p1, %p231_p0 }
   0x8   :  { %239 = shalt.err (!%p236_p2)
}
   0x9   :  { %s240_s18 = scalar_lea.vmem %s16_s10, 256  ;;  %p245_p4 = scmp.lt.s32.totalorder %s16_s10, %s16_s10 }
   0xa   :  { %p241_p3 = scmp.ne.s32.totalorder %s16_s10, %s240_s18  ;;  %p246_p5 = scmp.lt.s32.totalorder %s240_s18, %s240_s18 }
   0xc   :  { %p247_p6 = por %p246_p5, %p245_p4 }
   0xe   :  { %p248_p7 = pnand %p247_p6, %p241_p3 }
  0x10   :  { %251 = shalt.err (!%p248_p7)
}
  0x11   :  { %s303_s19 = smov 64   ;;  %s304_s20 = smov 4  }
  0x12   :  { %21 = dma.hbm_to_vmem [thread:$0]  %s378_s0, 256, %s16_s10, [#allocation4], %s303_s19, %s303_s19, %s304_s20  }
  0x13   :  { %s305_s23 = smov [#allocation6]   ;;  %s252_s27 = scalar_lea.hbm %s379_s1, 256 }
  0x14   :  { %s27_s24 = sshll.u32 %s305_s23, 4  ;;  %p253_p8 = scmp.ne.s32.totalorder %s379_s1, %s252_s27  ;;  %s28_s24 = int_to_ptr.vmem [resolvable:$true] %s27_s24 }
  0x15   :  { %p256_p9 = scmp.lt.u32.totalorder %s252_s27, %s379_s1 }
  0x17   :  { %p258_p10 = pnand %p256_p9, %p253_p8 }
  0x19   :  { %261 = shalt.err (!%p258_p10)
}
  0x1a   :  { %s262_s4 = scalar_lea.vmem %s28_s24, 256  ;;  %p267_p12 = scmp.lt.s32.totalorder %s28_s24, %s28_s24 }
  0x1b   :  { %p263_p11 = scmp.ne.s32.totalorder %s28_s24, %s262_s4  ;;  %p268_p13 = scmp.lt.s32.totalorder %s262_s4, %s262_s4 }
  0x1d   :  { %p269_p0 = por %p268_p13, %p267_p12 }
  0x1f   :  { %p270_p1 = pnand %p269_p0, %p263_p11 }
  0x21   :  { %273 = shalt.err (!%p270_p1)
}
  0x22   :  { %33 = dma.hbm_to_vmem [thread:$0]  %s379_s1, 256, %s28_s24, [#allocation7], %s303_s19, %s303_s19, %s304_s20  }
  0x23   :  { %296 = dma.done.wait [#allocation4], 256  }
  0x24   :  { %297 = vsyncadd [#allocation4], 4294967040 }
  0x25   :  { %298 = dma.done.wait [#allocation7], 256  }
  0x26   :  { %299 = vsyncadd [#allocation7], 4294967040  ;;  %vm45_vm0 = vcmask 261120   ;;  %v306_v0 = vmov 0.0   ;;  %v226_v1 = vld [vmem:[#allocation6] sm:$0xff]   ;;  %v227_v2 = vld [vmem:[#allocation6 + $0x8] sm:$0xff]  }
  0x27   :  { %48 = vst.msk [vmem:[#allocation2 + $0x10] sm:$0xff] %vm45_vm0, %v306_v0  ;;  %46 = vst.msk [vmem:[#allocation2] sm:$0xff] %vm45_vm0, %v306_v0  ;;  %212 = vmatprep.subr.bf16.mxu0 %v226_v1  ;;  %v228_v3 = vld [vmem:[#allocation3] sm:$0xff]   ;;  %v229_v4 = vld [vmem:[#allocation3 + $0x8] sm:$0xff]   ;;  %vm171_vm1 = vcmask 257024   ;;  %s307_s1 = smov [#allocation8]  }
  0x28   :  { %47 = vst.msk [vmem:[#allocation2 + $0x8] sm:$0xff] %vm45_vm0, %v306_v0  ;;  %49 = vst.msk [vmem:[#allocation2 + $0x18] sm:$0xff] %vm45_vm0, %v306_v0  ;;  %213 = vmatpush3.bf16.msra.mxu0 %v226_v1  ;;  %216 = vmatprep.mubr.msk.bf16.mxu0 %vm45_vm0, %v228_v3  ;;  %s181_s6 = sshll.u32 %s307_s1, 4  ;;  %s182_s6 = int_to_ptr.vmem [resolvable:$true] %s181_s6 }
  0x29   :  { %214 = vmatprep.subr.bf16.mxu0 %v227_v2  ;;  %s274_s7 = scalar_lea.vmem %s182_s6, 256  ;;  %p279_p3 = scmp.lt.s32.totalorder %s182_s6, %s182_s6 }
  0x2a   :  { %p275_p2 = scmp.ne.s32.totalorder %s182_s6, %s274_s7  ;;  %p280_p4 = scmp.lt.s32.totalorder %s274_s7, %s274_s7 }
  0x2c   :  { %215 = vmatpush3.bf16.msra.mxu0 %v227_v2  ;;  %p281_p5 = por %p280_p4, %p279_p3 }
  0x2e   :  { %v52_v5 = vld [vmem:[#allocation2 + $0x10] sm:$0xff]  ;;  %v50_v6 = vld [vmem:[#allocation2] sm:$0xff]  ;;  %p282_p6 = pnand %p281_p5, %p275_p2 }
  0x2f   :  { %217 = vmatmul.mubr.msk.bf16.vlgmr.msra.gmra.mrb[0].mxu0 %vm45_vm0, %v229_v4  ;;  %v53_v8 = vld [vmem:[#allocation2 + $0x18] sm:$0xff]  ;;  %v51_v11 = vld [vmem:[#allocation2 + $0x8] sm:$0xff] }
 0x102   :  { %v218_v7 = vpop.f32.mrb[0].mxu0 }
 0x103   :  { %v142_v9 = vadd.f32 %v218_v7, %v52_v5  ;;  %v125_v10 = vpop.f32.mrb[1].mxu0 }
 0x104   :  { %v140_v12 = vadd.f32 %v125_v10, %v50_v6  ;;  %v219_v13 = vpop.f32.mrb[2].mxu0 }
 0x105   :  { %146 = vst.msk [vmem:[#allocation2 + $0x10] sm:$0xff] %vm45_vm0, %v142_v9  ;;  %v143_v14 = vadd.f32 %v219_v13, %v53_v8  ;;  %v128_v15 = vpop.f32.mrb[3].mxu0 }
 0x106   :  { %144 = vst.msk [vmem:[#allocation2] sm:$0xff] %vm45_vm0, %v140_v12  ;;  %v141_v16 = vadd.f32 %v128_v15, %v51_v11 }
 0x107   :  { %147 = vst.msk [vmem:[#allocation2 + $0x18] sm:$0xff] %vm45_vm0, %v143_v14 }
 0x108   :  { %145 = vst.msk [vmem:[#allocation2 + $0x8] sm:$0xff] %vm45_vm0, %v141_v16 }
 0x10c   :  { %v153_v17 = vld [vmem:[#allocation2 + $0x10] sm:$0xff] }
 0x10d   :  { %v151_v18 = vld [vmem:[#allocation2] sm:$0xff]  ;;  %v206_v19 = vpack.c.bf16 %v153_v17, %v153_v17 }
 0x10e   :  { %v154_v20 = vld [vmem:[#allocation2 + $0x18] sm:$0xff]  ;;  %v204_v21 = vpack.c.bf16 %v151_v18, %v151_v18 }
 0x10f   :  { %v152_v22 = vld [vmem:[#allocation2 + $0x8] sm:$0xff]  ;;  %v207_v23 = vpack.c.bf16 %v154_v20, %v154_v20  ;;  %174 = vst.msk [vmem:[#allocation8 + $0x8] sm:$0xf] %vm171_vm1, %v206_v19 }
 0x110   :  { %v205_v24 = vpack.c.bf16 %v152_v22, %v152_v22  ;;  %172 = vst.msk [vmem:[#allocation8] sm:$0xf] %vm171_vm1, %v204_v21 }
 0x111   :  { %175 = vst.msk [vmem:[#allocation8 + $0xc] sm:$0xf] %vm171_vm1, %v207_v23 }
 0x112   :  { %173 = vst.msk [vmem:[#allocation8 + $0x4] sm:$0xf] %vm171_vm1, %v205_v24 }
 0x113   :  { %285 = shalt.err (!%p282_p6)
}
 0x114   :  { %s286_s10 = scalar_lea.hbm %s380_s2, 256 }
 0x115   :  { %p287_p7 = scmp.ne.s32.totalorder %s380_s2, %s286_s10  ;;  %p290_p8 = scmp.lt.u32.totalorder %s286_s10, %s380_s2 }
 0x117   :  { %p292_p9 = pnand %p290_p8, %p287_p7 }
 0x119   :  { %295 = shalt.err (!%p292_p9)
}
 0x11a   :  { %187 = dma.vmem_to_hbm [thread:$0]  %s182_s6, 256, %s380_s2, [#allocation5], %s303_s19, %s303_s19, %s304_s20  }
 0x11b   :  { %300 = dma.done.wait [#allocation5], 256  }
 0x11c   :  { %301 = vsyncadd [#allocation5], 4294967040 }
 0x11d   :  { %191 = vsyncpa [#allocation4], 1 }
 0x11e   :  { %192 = vsyncpa [#allocation7], 1 }
 0x11f   :  { %193 = vsyncpa [#allocation5], 1 }

</bundles_post_ra>
